<compile_context>
chip_gen: v5e
topology: v5e:2x2
jax: 0.10.0
libtpu: 0.0.40
codegen_flags: <defaults>
</compile_context>

<pallas_src>
import math

import jax
import jax.numpy as jnp
from jax import lax
from jax.experimental import pallas as pl
from jax.experimental.pallas import tpu as pltpu

BN_EPS = 1e-5


def _nonlocal_kernel(x_ref, wproj_ref, wout_ref, bn_ref, out_ref):
    # x_ref     : (B, C, T)      input in the module's native NCW layout
    # wproj_ref : (3Ci, C+1)     [W_theta; W_phi; W_g | b_theta; b_phi; b_g]
    # wout_ref  : (C, Ci+1)      [W_w | b_w]
    # bn_ref    : (C, 2)         [gamma | beta]
    # out_ref   : (B, C, T)
    B, C, T = x_ref.shape
    Ci = wproj_ref.shape[0] // 3

    x = x_ref[...]                                      # (B, C, T)
    wproj = wproj_ref[...]                              # (3Ci, C+1)
    wout = wout_ref[...]                                # (C, Ci+1)
    bn = bn_ref[...]                                    # (C, 2)
    gamma = bn[:, 0:1]                                  # (C, 1)
    beta = bn[:, 1:2]                                   # (C, 1)

    # Bias fold: append a ones row along the contraction (channel/sublane) axis.
    # Offset C is a multiple of 8, so this is a tile-aligned sublane concat (no relayout).
    ones_b = jnp.ones((B, 1, T), jnp.float32)
    ones_1t = jnp.ones((1, T), jnp.float32)
    x_aug = jnp.concatenate([x, ones_b], axis=1)        # (B, C+1, T)

    wy_list = []
    for b in range(B):                                  # B=2, static unroll; leading-axis slices only
        xb = x_aug[b]                                   # (C+1, T)

        # Fused theta/phi/g 1x1-conv projection (bias rides along in the matmul).
        proj = jnp.dot(wproj, xb, preferred_element_type=jnp.float32)       # (3Ci, T)
        th = proj[0:Ci, :]                              # sublane slices at multiples of 8 — cheap
        ph = proj[Ci:2 * Ci, :]
        gg = proj[2 * Ci:3 * Ci, :]

        # f[t, s] = sum_i th[i, t] * ph[i, s]  — contraction expressed directly (no .T).
        f = lax.dot_general(th, ph, (((0,), (0,)), ((), ())),
                            preferred_element_type=jnp.float32)             # (T, T)
        f = f - jnp.max(f, axis=-1, keepdims=True)
        e = jnp.exp(f)
        p = e / jnp.sum(e, axis=-1, keepdims=True)      # exact reciprocal (EUP idle here)

        # y[i, t] = sum_s g[i, s] * p[t, s]  — NT form, no materialized transpose.
        y = lax.dot_general(gg, p, (((1,), (1,)), ((), ())),
                            preferred_element_type=jnp.float32)             # (Ci, T)

        # Output 1x1 conv with b_w folded in via a ones row (offset Ci is 8-aligned).
        y_aug = jnp.concatenate([y, ones_1t], axis=0)                       # (Ci+1, T)
        wy_list.append(jnp.dot(wout, y_aug, preferred_element_type=jnp.float32))  # (C, T)

    # BatchNorm1d (training-mode batch statistics), one-pass sum / sum-of-squares over B*T,
    # folded to a single per-channel scale/shift (only two (C,1) lane broadcasts).
    inv_n = 1.0 / float(B * T)
    s1 = sum(jnp.sum(w, axis=1, keepdims=True) for w in wy_list)            # (C, 1)
    s2 = sum(jnp.sum(w * w, axis=1, keepdims=True) for w in wy_list)        # (C, 1)
    mean = s1 * inv_n
    var = s2 * inv_n - mean * mean
    scale = gamma * lax.rsqrt(var + BN_EPS)                                 # (C, 1)
    shift = beta - mean * scale                                             # (C, 1)

    # ReLU; MaxPool1d(kernel_size=1, stride=1) is the identity; residual add.
    # Leading-axis (batch-aligned) stores: tile-aligned full blocks, no lane extraction.
    for b in range(B):
        out_ref[b] = jnp.maximum(wy_list[b] * scale + shift, 0.0) + x[b]


def pack_params(w_theta, b_theta, w_phi, b_phi, w_g, b_g, w_w, b_w, gamma, beta):
    """Host-side, one-time packing (outside the hot path).

    Returns:
      w_proj : (3*Ci, C+1)  [W_theta; W_phi; W_g | b_theta; b_phi; b_g]
      w_out  : (C, Ci+1)    [W_w | b_w]
      bn_gb  : (C, 2)       [gamma | beta]
    """
    w_all = jnp.concatenate([w_theta, w_phi, w_g], axis=0)
    b_all = jnp.concatenate([b_theta, b_phi, b_g], axis=0)
    w_proj = jnp.concatenate([w_all, b_all[:, None]], axis=1).astype(jnp.float32)
    w_out = jnp.concatenate([w_w, b_w[:, None]], axis=1).astype(jnp.float32)
    bn_gb = jnp.stack([gamma, beta], axis=1).astype(jnp.float32)
    return w_proj, w_out, bn_gb


def nonlocal_block_1d(x, w_proj, w_out, bn_gb):
    """x: (B, C, T) float32 (PyTorch NCW). Returns z: (B, C, T). No wrapper data movement."""
    B, C, T = x.shape
    Ci = w_proj.shape[0] // 3
    flops = (2 * B * (3 * Ci) * (C + 1) * T        # fused theta/phi/g projection
             + 2 * B * T * T * Ci                  # theta^T @ phi
             + 2 * B * Ci * T * T                  # g @ p^T
             + 2 * B * C * (Ci + 1) * T            # output 1x1 conv
             + 10 * B * C * T + 5 * B * T * T)     # softmax / BN / ReLU elementwise
    transcendentals = B * T * T + C                # exp in softmax + rsqrt in BN
    bytes_accessed = 4 * (2 * B * C * T            # x in + z out
                          + w_proj.size + w_out.size + bn_gb.size)
    vmem = pl.BlockSpec(memory_space=pltpu.MemorySpace.VMEM)
    return pl.pallas_call(
        _nonlocal_kernel,
        out_shape=jax.ShapeDtypeStruct((B, C, T), jnp.float32),
        in_specs=[vmem, vmem, vmem, vmem],
        out_specs=vmem,
        cost_estimate=pl.CostEstimate(flops=int(flops),
                                      transcendentals=int(transcendentals),
                                      bytes_accessed=int(bytes_accessed)),
    )(x, w_proj, w_out, bn_gb)


def nonlocal_block_1d_ref(x, w_theta, b_theta, w_phi, b_phi, w_g, b_g, w_w, b_w, gamma, beta):
    """Pure-JAX reference mirroring the PyTorch forward (training-mode BatchNorm)."""
    g_x = jnp.einsum("ic,bct->bit", w_g, x) + b_g[None, :, None]          # (B, Ci, T)
    theta_x = jnp.einsum("ic,bct->bit", w_theta, x) + b_theta[None, :, None]
    phi_x = jnp.einsum("ic,bct->bit", w_phi, x) + b_phi[None, :, None]
    f = jnp.einsum("bit,bis->bts", theta_x, phi_x)                         # (B, T, T)
    p = jax.nn.softmax(f, axis=-1)
    y = jnp.einsum("bts,bis->bit", p, g_x)                                 # (B, Ci, T)
    wy = jnp.einsum("ci,bit->bct", w_w, y) + b_w[None, :, None]            # (B, C, T)
    mean = jnp.mean(wy, axis=(0, 2), keepdims=True)
    var = jnp.mean((wy - mean) ** 2, axis=(0, 2), keepdims=True)
    bn = (wy - mean) * lax.rsqrt(var + BN_EPS) * gamma[None, :, None] + beta[None, :, None]
    return jnp.maximum(bn, 0.0) + x


if __name__ == "__main__":
    key = jax.random.PRNGKey(0)
    B, C, T = 2, 16, 32
    Ci = C // 2  # inter_channels = in_channels // 2

    ks = jax.random.split(key, 10)
    x = jax.random.normal(ks[0], (B, C, T), jnp.float32)

    sc_in = 1.0 / math.sqrt(C)
    sc_i = 1.0 / math.sqrt(Ci)
    w_theta = jax.random.normal(ks[1], (Ci, C), jnp.float32) * sc_in
    b_theta = jax.random.normal(ks[2], (Ci,), jnp.float32) * sc_in
    w_phi = jax.random.normal(ks[3], (Ci, C), jnp.float32) * sc_in
    b_phi = jax.random.normal(ks[4], (Ci,), jnp.float32) * sc_in
    w_g = jax.random.normal(ks[5], (Ci, C), jnp.float32) * sc_in
    b_g = jax.random.normal(ks[6], (Ci,), jnp.float32) * sc_in
    w_w = jax.random.normal(ks[7], (C, Ci), jnp.float32) * sc_i
    b_w = jax.random.normal(ks[8], (C,), jnp.float32) * sc_i
    # BatchNorm1d: nn.init.constant_(weight, 0), nn.init.constant_(bias, 0)
    gamma = jnp.zeros((C,), jnp.float32)
    beta = jnp.zeros((C,), jnp.float32)

    # 1) Module's actual init (BN gamma=beta=0 -> W_y branch contributes 0 -> z == x exactly).
    w_proj, w_out, bn_gb = pack_params(w_theta, b_theta, w_phi, b_phi, w_g, b_g,
                                       w_w, b_w, gamma, beta)
    z = nonlocal_block_1d(x, w_proj, w_out, bn_gb)
    jax.block_until_ready(z)
    z_ref = nonlocal_block_1d_ref(x, w_theta, b_theta, w_phi, b_phi, w_g, b_g,
                                  w_w, b_w, gamma, beta)
    assert jnp.allclose(z, z_ref, atol=1e-5, rtol=1e-5)
    assert jnp.allclose(z, x, atol=1e-6)  # zero-init BN makes the block an identity

    # 2) Full attention + BN path with non-zero BN params (same forward semantics).
    #    Softmax reciprocal is exact now; remaining tolerance covers TPU default (bf16-pass) MXU
    #    precision differing between the fused kernel matmuls and the reference einsum path.
    gamma2 = jnp.full((C,), 0.7, jnp.float32)
    beta2 = jnp.full((C,), 0.1, jnp.float32)
    w_proj2, w_out2, bn_gb2 = pack_params(w_theta, b_theta, w_phi, b_phi, w_g, b_g,
                                          w_w, b_w, gamma2, beta2)
    z2 = nonlocal_block_1d(x, w_proj2, w_out2, bn_gb2)
    jax.block_until_ready(z2)
    z2_ref = nonlocal_block_1d_ref(x, w_theta, b_theta, w_phi, b_phi, w_g, b_g,
                                   w_w, b_w, gamma2, beta2)
    assert jnp.allclose(z2, z2_ref, atol=2e-3, rtol=2e-3)

    print("KERNEL_OK")
</pallas_src>

<mosaic_0001>
module attributes {stable_mosaic.version = 11 : i64} {
  func.func @_nonlocal_kernel(%arg0: memref<2x16x32xf32, #tpu.memory_space<vmem>>, %arg1: memref<24x17xf32, #tpu.memory_space<vmem>>, %arg2: memref<16x9xf32, #tpu.memory_space<vmem>>, %arg3: memref<16x2xf32, #tpu.memory_space<vmem>>, %arg4: memref<2x16x32xf32, #tpu.memory_space<vmem>>) attributes {dimension_semantics = [], scalar_prefetch = 0 : i64, scratch_operands = 0 : i64, tpu.core_type = #tpu.core_type<tc>} {
    %c0 = arith.constant 0 : index
    %c0_0 = arith.constant 0 : index
    %c0_1 = arith.constant 0 : index
    %0 = vector.load %arg0[%c0, %c0_0, %c0_1] : memref<2x16x32xf32, #tpu.memory_space<vmem>>, vector<2x16x32xf32>
    %c0_2 = arith.constant 0 : index
    %c0_3 = arith.constant 0 : index
    %1 = vector.load %arg1[%c0_2, %c0_3] : memref<24x17xf32, #tpu.memory_space<vmem>>, vector<24x17xf32>
    %c0_4 = arith.constant 0 : index
    %c0_5 = arith.constant 0 : index
    %2 = vector.load %arg2[%c0_4, %c0_5] : memref<16x9xf32, #tpu.memory_space<vmem>>, vector<16x9xf32>
    %c0_6 = arith.constant 0 : index
    %c0_7 = arith.constant 0 : index
    %3 = vector.load %arg3[%c0_6, %c0_7] : memref<16x2xf32, #tpu.memory_space<vmem>>, vector<16x2xf32>
    %4 = vector.extract_strided_slice %3 {offsets = [0, 0], sizes = [16, 1], strides = [1, 1]} : vector<16x2xf32> to vector<16x1xf32>
    %5 = vector.extract_strided_slice %3 {offsets = [0, 1], sizes = [16, 1], strides = [1, 1]} : vector<16x2xf32> to vector<16x1xf32>
    %cst = arith.constant 1.000000e+00 : f32
    %6 = vector.broadcast %cst : f32 to vector<2x1x32xf32>
    %cst_8 = arith.constant 1.000000e+00 : f32
    %7 = vector.broadcast %cst_8 : f32 to vector<1x32xf32>
    %8 = tpu.concatenate %0, %6 in 1 : vector<2x16x32xf32>, vector<2x1x32xf32> -> vector<2x17x32xf32>
    %9 = vector.extract_strided_slice %8 {offsets = [0, 0, 0], sizes = [1, 17, 32], strides = [1, 1, 1]} : vector<2x17x32xf32> to vector<1x17x32xf32>
    %10 = vector.shape_cast %9 : vector<1x17x32xf32> to vector<17x32xf32>
    %cst_9 = arith.constant dense<0.000000e+00> : vector<24x32xf32>
    %11 = tpu.matmul %1, %10, %cst_9 {dimension_numbers = #tpu.dot_dimension_numbers<[1], [0], [0], [1], [0, 0, 1, 1], [], []>} : vector<24x17xf32>, vector<17x32xf32>, vector<24x32xf32> -> vector<24x32xf32>
    %12 = vector.extract_strided_slice %11 {offsets = [0, 0], sizes = [8, 32], strides = [1, 1]} : vector<24x32xf32> to vector<8x32xf32>
    %13 = vector.extract_strided_slice %11 {offsets = [8, 0], sizes = [8, 32], strides = [1, 1]} : vector<24x32xf32> to vector<8x32xf32>
    %14 = vector.extract_strided_slice %11 {offsets = [16, 0], sizes = [8, 32], strides = [1, 1]} : vector<24x32xf32> to vector<8x32xf32>
    %cst_10 = arith.constant dense<0.000000e+00> : vector<32x32xf32>
    %15 = tpu.matmul %12, %13, %cst_10 {dimension_numbers = #tpu.dot_dimension_numbers<[0], [0], [1], [1], [0, 1, 1, 1], [], []>} : vector<8x32xf32>, vector<8x32xf32>, vector<32x32xf32> -> vector<32x32xf32>
    %cst_11 = arith.constant dense<0xFF800000> : vector<32xf32>
    %16 = vector.multi_reduction <maximumf>, %15, %cst_11 [1] : vector<32x32xf32> to vector<32xf32>
    %17 = vector.shape_cast %16 : vector<32xf32> to vector<32x1xf32>
    %18 = vector.broadcast %17 : vector<32x1xf32> to vector<32x32xf32>
    %19 = arith.subf %15, %18 : vector<32x32xf32>
    %20 = math.exp %19 : vector<32x32xf32>
    %cst_12 = arith.constant dense<0.000000e+00> : vector<32xf32>
    %21 = vector.multi_reduction <add>, %20, %cst_12 [1] : vector<32x32xf32> to vector<32xf32>
    %22 = vector.shape_cast %21 : vector<32xf32> to vector<32x1xf32>
    %23 = vector.broadcast %22 : vector<32x1xf32> to vector<32x32xf32>
    %24 = arith.divf %20, %23 : vector<32x32xf32>
    %cst_13 = arith.constant dense<0.000000e+00> : vector<8x32xf32>
    %25 = tpu.matmul %14, %24, %cst_13 {dimension_numbers = #tpu.dot_dimension_numbers<[1], [1], [0], [0], [0, 0, 1, 0], [], []>} : vector<8x32xf32>, vector<32x32xf32>, vector<8x32xf32> -> vector<8x32xf32>
    %26 = tpu.concatenate %25, %7 in 0 : vector<8x32xf32>, vector<1x32xf32> -> vector<9x32xf32>
    %cst_14 = arith.constant dense<0.000000e+00> : vector<16x32xf32>
    %27 = tpu.matmul %2, %26, %cst_14 {dimension_numbers = #tpu.dot_dimension_numbers<[1], [0], [0], [1], [0, 0, 1, 1], [], []>} : vector<16x9xf32>, vector<9x32xf32>, vector<16x32xf32> -> vector<16x32xf32>
    %28 = vector.extract_strided_slice %8 {offsets = [1, 0, 0], sizes = [1, 17, 32], strides = [1, 1, 1]} : vector<2x17x32xf32> to vector<1x17x32xf32>
    %29 = vector.shape_cast %28 : vector<1x17x32xf32> to vector<17x32xf32>
    %cst_15 = arith.constant dense<0.000000e+00> : vector<24x32xf32>
    %30 = tpu.matmul %1, %29, %cst_15 {dimension_numbers = #tpu.dot_dimension_numbers<[1], [0], [0], [1], [0, 0, 1, 1], [], []>} : vector<24x17xf32>, vector<17x32xf32>, vector<24x32xf32> -> vector<24x32xf32>
    %31 = vector.extract_strided_slice %30 {offsets = [0, 0], sizes = [8, 32], strides = [1, 1]} : vector<24x32xf32> to vector<8x32xf32>
    %32 = vector.extract_strided_slice %30 {offsets = [8, 0], sizes = [8, 32], strides = [1, 1]} : vector<24x32xf32> to vector<8x32xf32>
    %33 = vector.extract_strided_slice %30 {offsets = [16, 0], sizes = [8, 32], strides = [1, 1]} : vector<24x32xf32> to vector<8x32xf32>
    %cst_16 = arith.constant dense<0.000000e+00> : vector<32x32xf32>
    %34 = tpu.matmul %31, %32, %cst_16 {dimension_numbers = #tpu.dot_dimension_numbers<[0], [0], [1], [1], [0, 1, 1, 1], [], []>} : vector<8x32xf32>, vector<8x32xf32>, vector<32x32xf32> -> vector<32x32xf32>
    %cst_17 = arith.constant dense<0xFF800000> : vector<32xf32>
    %35 = vector.multi_reduction <maximumf>, %34, %cst_17 [1] : vector<32x32xf32> to vector<32xf32>
    %36 = vector.shape_cast %35 : vector<32xf32> to vector<32x1xf32>
    %37 = vector.broadcast %36 : vector<32x1xf32> to vector<32x32xf32>
    %38 = arith.subf %34, %37 : vector<32x32xf32>
    %39 = math.exp %38 : vector<32x32xf32>
    %cst_18 = arith.constant dense<0.000000e+00> : vector<32xf32>
    %40 = vector.multi_reduction <add>, %39, %cst_18 [1] : vector<32x32xf32> to vector<32xf32>
    %41 = vector.shape_cast %40 : vector<32xf32> to vector<32x1xf32>
    %42 = vector.broadcast %41 : vector<32x1xf32> to vector<32x32xf32>
    %43 = arith.divf %39, %42 : vector<32x32xf32>
    %cst_19 = arith.constant dense<0.000000e+00> : vector<8x32xf32>
    %44 = tpu.matmul %33, %43, %cst_19 {dimension_numbers = #tpu.dot_dimension_numbers<[1], [1], [0], [0], [0, 0, 1, 0], [], []>} : vector<8x32xf32>, vector<32x32xf32>, vector<8x32xf32> -> vector<8x32xf32>
    %45 = tpu.concatenate %44, %7 in 0 : vector<8x32xf32>, vector<1x32xf32> -> vector<9x32xf32>
    %cst_20 = arith.constant dense<0.000000e+00> : vector<16x32xf32>
    %46 = tpu.matmul %2, %45, %cst_20 {dimension_numbers = #tpu.dot_dimension_numbers<[1], [0], [0], [1], [0, 0, 1, 1], [], []>} : vector<16x9xf32>, vector<9x32xf32>, vector<16x32xf32> -> vector<16x32xf32>
    %cst_21 = arith.constant dense<0.000000e+00> : vector<16xf32>
    %47 = vector.multi_reduction <add>, %27, %cst_21 [1] : vector<16x32xf32> to vector<16xf32>
    %48 = vector.shape_cast %47 : vector<16xf32> to vector<16x1xf32>
    %cst_22 = arith.constant 0.000000e+00 : f32
    %49 = vector.broadcast %cst_22 : f32 to vector<16x1xf32>
    %50 = arith.addf %49, %48 : vector<16x1xf32>
    %cst_23 = arith.constant dense<0.000000e+00> : vector<16xf32>
    %51 = vector.multi_reduction <add>, %46, %cst_23 [1] : vector<16x32xf32> to vector<16xf32>
    %52 = vector.shape_cast %51 : vector<16xf32> to vector<16x1xf32>
    %53 = arith.addf %50, %52 : vector<16x1xf32>
    %54 = arith.mulf %27, %27 : vector<16x32xf32>
    %cst_24 = arith.constant dense<0.000000e+00> : vector<16xf32>
    %55 = vector.multi_reduction <add>, %54, %cst_24 [1] : vector<16x32xf32> to vector<16xf32>
    %56 = vector.shape_cast %55 : vector<16xf32> to vector<16x1xf32>
    %cst_25 = arith.constant 0.000000e+00 : f32
    %57 = vector.broadcast %cst_25 : f32 to vector<16x1xf32>
    %58 = arith.addf %57, %56 : vector<16x1xf32>
    %59 = arith.mulf %46, %46 : vector<16x32xf32>
    %cst_26 = arith.constant dense<0.000000e+00> : vector<16xf32>
    %60 = vector.multi_reduction <add>, %59, %cst_26 [1] : vector<16x32xf32> to vector<16xf32>
    %61 = vector.shape_cast %60 : vector<16xf32> to vector<16x1xf32>
    %62 = arith.addf %58, %61 : vector<16x1xf32>
    %cst_27 = arith.constant 1.562500e-02 : f32
    %63 = vector.broadcast %cst_27 : f32 to vector<16x1xf32>
    %64 = arith.mulf %53, %63 : vector<16x1xf32>
    %cst_28 = arith.constant 1.562500e-02 : f32
    %65 = vector.broadcast %cst_28 : f32 to vector<16x1xf32>
    %66 = arith.mulf %62, %65 : vector<16x1xf32>
    %67 = arith.mulf %64, %64 : vector<16x1xf32>
    %68 = arith.subf %66, %67 : vector<16x1xf32>
    %cst_29 = arith.constant 9.99999974E-6 : f32
    %69 = vector.broadcast %cst_29 : f32 to vector<16x1xf32>
    %70 = arith.addf %68, %69 : vector<16x1xf32>
    %71 = math.rsqrt %70 : vector<16x1xf32>
    %72 = arith.mulf %4, %71 : vector<16x1xf32>
    %73 = arith.mulf %64, %72 : vector<16x1xf32>
    %74 = arith.subf %5, %73 : vector<16x1xf32>
    %75 = vector.broadcast %72 : vector<16x1xf32> to vector<16x32xf32>
    %76 = arith.mulf %27, %75 : vector<16x32xf32>
    %77 = vector.broadcast %74 : vector<16x1xf32> to vector<16x32xf32>
    %78 = arith.addf %76, %77 : vector<16x32xf32>
    %cst_30 = arith.constant 0.000000e+00 : f32
    %79 = vector.broadcast %cst_30 : f32 to vector<16x32xf32>
    %80 = arith.maximumf %78, %79 : vector<16x32xf32>
    %81 = vector.extract_strided_slice %0 {offsets = [0, 0, 0], sizes = [1, 16, 32], strides = [1, 1, 1]} : vector<2x16x32xf32> to vector<1x16x32xf32>
    %82 = vector.shape_cast %81 : vector<1x16x32xf32> to vector<16x32xf32>
    %83 = arith.addf %80, %82 : vector<16x32xf32>
    %c0_31 = arith.constant 0 : index
    %c0_32 = arith.constant 0 : index
    %c0_33 = arith.constant 0 : index
    %84 = vector.load %arg4[%c0_31, %c0_32, %c0_33] : memref<2x16x32xf32, #tpu.memory_space<vmem>>, vector<1x16x32xf32>
    %85 = vector.shape_cast %84 : vector<1x16x32xf32> to vector<16x32xf32>
    %86 = vector.shape_cast %83 : vector<16x32xf32> to vector<1x16x32xf32>
    tpu.vector_store %arg4[%c0_31, %c0_32, %c0_33], %86 {strides = array<i32>} : memref<2x16x32xf32, #tpu.memory_space<vmem>>, vector<1x16x32xf32>,
    %87 = vector.broadcast %72 : vector<16x1xf32> to vector<16x32xf32>
    %88 = arith.mulf %46, %87 : vector<16x32xf32>
    %89 = vector.broadcast %74 : vector<16x1xf32> to vector<16x32xf32>
    %90 = arith.addf %88, %89 : vector<16x32xf32>
    %cst_34 = arith.constant 0.000000e+00 : f32
    %91 = vector.broadcast %cst_34 : f32 to vector<16x32xf32>
    %92 = arith.maximumf %90, %91 : vector<16x32xf32>
    %93 = vector.extract_strided_slice %0 {offsets = [1, 0, 0], sizes = [1, 16, 32], strides = [1, 1, 1]} : vector<2x16x32xf32> to vector<1x16x32xf32>
    %94 = vector.shape_cast %93 : vector<1x16x32xf32> to vector<16x32xf32>
    %95 = arith.addf %92, %94 : vector<16x32xf32>
    %c1 = arith.constant 1 : index
    %c0_35 = arith.constant 0 : index
    %c0_36 = arith.constant 0 : index
    %96 = vector.load %arg4[%c1, %c0_35, %c0_36] : memref<2x16x32xf32, #tpu.memory_space<vmem>>, vector<1x16x32xf32>
    %97 = vector.shape_cast %96 : vector<1x16x32xf32> to vector<16x32xf32>
    %98 = vector.shape_cast %95 : vector<16x32xf32> to vector<1x16x32xf32>
    tpu.vector_store %arg4[%c1, %c0_35, %c0_36], %98 {strides = array<i32>} : memref<2x16x32xf32, #tpu.memory_space<vmem>>, vector<1x16x32xf32>,
    return
  }
}

</mosaic_0001>

<bundles_post_ra>
// kernel: tpu_custom_call.1
= control target key start
LH: loop header
LB: loop body
LE: loop exit
PB: predicated region body
PF: predicated region fallthrough
CT: control target
= control target key end

     0   :  { %9 = vsyncpa [#allocation3], 0  ;;  %s1130_s0 = inlined_call_operand.hbm [shape: f32[2,16,32], index: 0, kind: input, shape index: {}]   ;;  %s1131_s1 = inlined_call_operand.hbm [shape: f32[24,17], index: 1, kind: input, shape index: {}]   ;;  %s1132_s2 = inlined_call_operand.vmem [shape: f32[16,9], index: 2, kind: input, shape index: {}]   ;;  %s1133_s3 = inlined_call_operand.vmem [shape: f32[16,2], index: 3, kind: input, shape index: {}]   ;;  %s1134_s4 = inlined_call_operand.hbm [shape: f32[2,16,32], index: 4, kind: output, shape index: {}]  }
   0x1   :  { %10 = vsyncpa [#allocation6], 0 }
   0x2   :  { %11 = vsyncpa [#allocation4], 0  ;;  %s16_s17 = sshll.u32 %s1130_s0, 4  ;;  %s893_s18 = smov [#allocation2]   ;;  %s17_s17 = int_to_ptr.hbm [resolvable:$true] %s16_s17 }
   0x3   :  { %s18_s19 = sshll.u32 %s893_s18, 4  ;;  %s29_s22 = sshll.u32 %s1131_s1, 4  ;;  %s19_s19 = int_to_ptr.vmem [resolvable:$true] %s18_s19  ;;  %s30_s22 = int_to_ptr.hbm [resolvable:$true] %s29_s22 }
   0x4   :  { %s894_s23 = smov 128   ;;  %s895_s24 = smov 8  }
   0x5   :  { %24 = dma.hbm_to_vmem [thread:$0]  %s17_s17, 512, %s19_s19, [#allocation3], %s894_s23, %s894_s23, %s895_s24  }
   0x6   :  { %s896_s25 = smov [#allocation5]  }
   0x7   :  { %s31_s26 = sshll.u32 %s896_s25, 4  ;;  %s32_s26 = int_to_ptr.vmem [resolvable:$true] %s31_s26 }
   0x8   :  { %37 = dma.hbm_to_vmem [thread:$0]  %s30_s22, 384, %s32_s26, [#allocation6], %s894_s23, %s894_s23, %s895_s24  }
   0x9   :  { %887 = dma.done.wait [#allocation3], 512  }
   0xa   :  { %888 = vsyncadd [#allocation3], 4294966784 }
   0xb   :  { %889 = dma.done.wait [#allocation6], 384  }
   0xc   :  { %890 = vsyncadd [#allocation6], 4294966912  ;;  %vm71_vm0 = vcmask 1040384   ;;  %v897_v0 = vmov 1.0   ;;  %v943_v1 = vld [vmem:[#allocation2 + $0x8] sm:$0xff]  ;;  %v945_v2 = vld [vmem:[#allocation2] sm:$0xff] }
   0xd   :  { %731 = vmatpush.msk.msra.mxu0 %vm71_vm0, %v897_v0  ;;  %744 = vmatpush.msk.msra.mxu3 %vm71_vm0, %v897_v0  ;;  %v948_v3 = vld [vmem:[#allocation5] sm:$0xff]  ;;  %vm61_vm1 = vcmask 138240   ;;  %v953_v4 = vld [vmem:[#allocation5 + $0x8] sm:$0xff]  ;;  %vm133_vm2 = vcmask 64512   ;;  %vm175_vm3 = vcmask 261120   ;;  %v967_v19 = vld [vmem:[#allocation5 + $0x10] sm:$0xff] }
   0xe   :  { %s899_s30 = smov 1   ;;  %s717_s10 = sshll.u32 %s1134_s4, 4  ;;  %s718_s10 = int_to_ptr.hbm [resolvable:$true] %s717_s10 }
   0xf   :  { %89 = vmatpush.msra.mxu0 %v943_v1 }
  0x11   :  { %90 = vmatpush.msra.mxu0 %v945_v2 }
  0x12   :  { %732 = vmatmul.msk.f32.vlgmr.msra.gmra.mxu0 %vm61_vm1, %v948_v3 }
  0x1a   :  { %733 = vmatmul.msk.f32.gmra.mxu0 %vm61_vm1, %v953_v4 }
  0x22   :  { %734 = vmatmul.msk.f32.gmra.mxu0 %vm61_vm1, %v967_v19 }
  0x8f   :  { %v92_v5 = vpop.f32.mrf.mxu0 }
  0x90   :  { %101 = vxpose.xlu0.b32.start.end [1/1] (short) (narrow) %v92_v5, 32 }
  0x97   :  { %v95_v6 = vpop.f32.mrf.mxu0 }
  0x98   :  { %161 = vmatpush.msra.mxu1 %v95_v6 }
  0x9a   :  { %763 = vmatpush.msk.msrb.mxu1 %vm71_vm0, %v897_v0 }
 0x134   :  { %v117_v7 = vpop.trf.xlu0 }
 0x135   :  { %735 = vmatmul.msk.f32.vlgmr.msra.gmra.mxu1 %vm133_vm2, %v117_v7 }
 0x13c   :  { %v118_v8 = vpop.trf.xlu0 }
 0x13d   :  { %736 = vmatmul.msk.f32.gmra.mxu1 %vm133_vm2, %v118_v8 }
 0x144   :  { %v119_v9 = vpop.trf.xlu0 }
 0x145   :  { %737 = vmatmul.msk.f32.gmra.mxu1 %vm133_vm2, %v119_v9 }
 0x14c   :  { %v120_v10 = vpop.trf.xlu0 }
 0x14d   :  { %738 = vmatmul.msk.f32.gmra.mxu1 %vm133_vm2, %v120_v10 }
 0x1b2   :  { %v163_v11 = vpop.f32.mrf.mxu1 }
 0x1b3   :  { %v176_v12 = vsel %vm175_vm3, %v163_v11, -inf }
 0x1b4   :  { %177 = vmax.xlane.f32.xlu2 %v176_v12 }
 0x1ba   :  { %v166_v13 = vpop.f32.mrf.mxu1 }
 0x1bb   :  { %v179_v17 = vsel %vm175_vm3, %v166_v13, -inf }
 0x1c2   :  { %v169_v14 = vpop.f32.mrf.mxu1 }
 0x1c3   :  { %v182_v15 = vsel %vm175_vm3, %v169_v14, -inf }
 0x1c4   :  { %183 = vmax.xlane.f32.xlu1 %v182_v15 }
 0x1ca   :  { %v172_v16 = vpop.f32.mrf.mxu1 }
 0x1cb   :  { %v185_v18 = vsel %vm175_vm3, %v172_v16, -inf }
 0x1cc   :  { %180 = vmax.xlane.f32.xlu1 %v179_v17  ;;  %186 = vmax.xlane.f32.xlu0 %v185_v18 }
 0x227   :  { %v178_v20 = vpop.xlane.xlu2 %177 }
 0x228   :  { %v188_v23 = vsub.f32 %v163_v11, %v178_v20 }
 0x22a   :  { %v192_v25 = vmul.f32 1.442695, %v188_v23 }
 0x237   :  { %v184_v21 = vpop.xlane.xlu1 %183 }
 0x238   :  { %v190_v22 = vsub.f32 %v169_v14, %v184_v21 }
 0x23a   :  { %v196_v24 = vmul.f32 1.442695, %v190_v22 }
 0x23c   :  { %779 = vpow2.f32 %v196_v24 }
 0x23d   :  { %781 = vpow2.f32 %v192_v25 }
 0x23f   :  { %v187_v26 = vpop.xlane.xlu0 %186  ;;  %v181_v27 = vpop.xlane.xlu1 %180 }
 0x240   :  { %v191_v28 = vsub.f32 %v172_v16, %v187_v26  ;;  %v189_v31 = vsub.f32 %v166_v13, %v181_v27 }
 0x242   :  { %v971_v29 = vpop.eup %779  ;;  %v198_v30 = vmul.f32 1.442695, %v191_v28  ;;  %v194_v33 = vmul.f32 1.442695, %v189_v31  ;;  %v98_v31 = vpop.f32.mrf.mxu0 }
 0x243   :  { %v206_v32 = vsel %vm175_vm3, %v971_v29, 0.0  ;;  %v975_v34 = vpop.eup %781 }
 0x244   :  { %207 = vadd.xlane.f32.xlu1 %v206_v32  ;;  %783 = vpow2.f32 %v198_v30  ;;  %v200_v36 = vsel %vm175_vm3, %v975_v34, 0.0  ;;  %v1010_v32 = vld [vmem:[%s1132_s2] sm:$0xff] }
 0x245   :  { %785 = vpow2.f32 %v194_v33 }
 0x24a   :  { %v784_v35 = vpop.eup %783 }
 0x24b   :  { %v209_v37 = vsel %vm175_vm3, %v784_v35, 0.0  ;;  %v980_v38 = vpop.eup %785 }
 0x24c   :  { %201 = vadd.xlane.f32.xlu1 %v200_v36  ;;  %210 = vadd.xlane.f32.xlu2 %v209_v37  ;;  %v203_v39 = vsel %vm175_vm3, %v980_v38, 0.0  ;;  %v1024_v36 = vld [vmem:[%s1132_s2 + $0x8] sm:$0xff] }
 0x254   :  { %204 = vadd.xlane.f32.xlu2 %v203_v39 }
 0x2b7   :  { %v208_v40 = vpop.xlane.xlu1 %207 }
 0x2b8   :  { %787 = vrcp.f32 %v208_v40  ;;  %vm247_vm6 = vweird.f32 %v208_v40  ;;  %v253_v58 = vand.u32 2147483648, %v208_v40  ;;  %v251_v61 = vand.u32 2147483647, %v208_v40 }
 0x2ba   :  { %v254_v9 = vor.u32 1.1754944e-38, %v253_v58  ;;  %vm252_vm11 = vcmp.eq.f32.partialorder %v251_v61, 8.507059e+37 }
 0x2be   :  { %v788_v41 = vpop.eup %787 }
 0x2bf   :  { %v984_v42 = vpop.xlane.xlu1 %201  ;;  %v243_v43 = vmul.f32 %v788_v41, %v208_v40  ;;  %v211_v44 = vpop.xlane.xlu2 %210  ;;  %vm248_vm4 = vweird.f32 %v788_v41 }
 0x2c0   :  { %789 = vrcp.f32 %v984_v42  ;;  %v268_v53 = vand.u32 2147483648, %v211_v44  ;;  %v266_v54 = vand.u32 2147483647, %v211_v44  ;;  %vm262_vm7 = vweird.f32 %v211_v44  ;;  %vm988_vm8 = vmor %vm247_vm6, %vm248_vm4 }
 0x2c1   :  { %791 = vrcp.f32 %v211_v44  ;;  %v244_v45 = vsub.f32 1.0, %v243_v43  ;;  %vm217_vm14 = vweird.f32 %v984_v42  ;;  %v223_v18 = vand.u32 2147483648, %v984_v42 }
 0x2c2   :  { %v269_v63 = vor.u32 1.1754944e-38, %v268_v53  ;;  %vm267_vm10 = vcmp.eq.f32.partialorder %v266_v54, 8.507059e+37  ;;  %v221_v22 = vand.u32 2147483647, %v984_v42 }
 0x2c3   :  { %v245_v48 = vmul.f32 %v788_v41, %v244_v45  ;;  %v224_v26 = vor.u32 1.1754944e-38, %v223_v18 }
 0x2c5   :  { %v246_v57 = vadd.f32 %v788_v41, %v245_v48 }
 0x2c6   :  { %v790_v46 = vpop.eup %789 }
 0x2c7   :  { %v792_v47 = vpop.eup %791  ;;  %v213_v49 = vmul.f32 %v790_v46, %v984_v42  ;;  %v205_v51 = vpop.xlane.xlu2 %204  ;;  %v250_v8 = vsel %vm988_vm8, %v788_v41, %v246_v57  ;;  %vm218_vm12 = vweird.f32 %v790_v46  ;;  %vm307_vm8 = vcmask 72704  }
 0x2c8   :  { %v258_v50 = vmul.f32 %v792_v47, %v211_v44  ;;  %793 = vrcp.f32 %v205_v51  ;;  %vm263_vm5 = vweird.f32 %v792_v47  ;;  %v238_v13 = vand.u32 2147483648, %v205_v51  ;;  %vm219_vm4 = vmor %vm217_vm14, %vm218_vm12 }
 0x2c9   :  { %v214_v55 = vsub.f32 1.0, %v213_v49  ;;  %vm264_vm9 = vmor %vm262_vm7, %vm263_vm5  ;;  %v255_v14 = vsel %vm252_vm11, %v254_v9, %v250_v8  ;;  %v236_v16 = vand.u32 2147483647, %v205_v51  ;;  %vm232_vm15 = vweird.f32 %v205_v51 }
 0x2ca   :  { %v259_v52 = vsub.f32 1.0, %v258_v50  ;;  %v256_v20 = vmul.f32 %v971_v29, %v255_v14  ;;  %v239_v23 = vor.u32 1.1754944e-38, %v238_v13  ;;  %vm222_vm7 = vcmp.eq.f32.partialorder %v221_v22, 8.507059e+37 }
 0x2cb   :  { %v215_v5 = vmul.f32 %v790_v46, %v214_v55  ;;  %vm237_vm6 = vcmp.eq.f32.partialorder %v236_v16, 8.507059e+37 }
 0x2cc   :  { %v260_v56 = vmul.f32 %v792_v47, %v259_v52 }
 0x2cd   :  { %v216_v17 = vadd.f32 %v790_v46, %v215_v5 }
 0x2ce   :  { %v261_v59 = vadd.f32 %v792_v47, %v260_v56  ;;  %v794_v62 = vpop.eup %793 }
 0x2cf   :  { %v228_v6 = vmul.f32 %v794_v62, %v205_v51  ;;  %vm233_vm13 = vweird.f32 %v794_v62  ;;  %v220_v25 = vsel %vm219_vm4, %v790_v46, %v216_v17 }
 0x2d0   :  { %v265_v7 = vsel %vm264_vm9, %v792_v47, %v261_v59  ;;  %vm234_vm5 = vmor %vm232_vm15, %vm233_vm13  ;;  %v225_v30 = vsel %vm222_vm7, %v224_v26, %v220_v25 }
 0x2d1   :  { %v270_v10 = vsel %vm267_vm10, %v269_v63, %v265_v7  ;;  %v229_v11 = vsub.f32 1.0, %v228_v6  ;;  %v226_v29 = vmul.f32 %v975_v34, %v225_v30  ;;  %v1014_v34 = vld [vmem:[#allocation2 + $0x18] sm:$0xff] }
 0x2d2   :  { %v271_v12 = vmul.f32 %v784_v35, %v270_v10  ;;  %v1018_v35 = vld [vmem:[#allocation2 + $0x10] sm:$0xff] }
 0x2d3   :  { %v230_v15 = vmul.f32 %v794_v62, %v229_v11 }
 0x2d4   :  { %739 = vmatpush.xpose.msk.msrb.mxu0 %vm175_vm3, %v271_v12 }
 0x2d5   :  { %v231_v21 = vadd.f32 %v794_v62, %v230_v15 }
 0x2d7   :  { %v235_v24 = vsel %vm234_vm5, %v794_v62, %v231_v21 }
 0x2d8   :  { %740 = vmatpush.xpose.msk.msrb.mxu0 %vm175_vm3, %v256_v20  ;;  %v240_v27 = vsel %vm237_vm6, %v239_v23, %v235_v24 }
 0x2d9   :  { %v241_v28 = vmul.f32 %v980_v38, %v240_v27 }
 0x2dc   :  { %741 = vmatpush.xpose.msk.msrb.mxu0 %vm175_vm3, %v241_v28 }
 0x2e0   :  { %742 = vmatpush.xpose.msk.msrb.mxu0 %vm175_vm3, %v226_v29 }
 0x2e3   :  { %743 = vmatmul.msk.f32.vlgmr.msrb.gmra.mxu0 %vm175_vm3, %v98_v31 }
 0x2e4   :  { %760 = vmatpush.msk.msra.mxu0 %vm71_vm0, %v897_v0 }
 0x360   :  { %v304_v33 = vpop.f32.mrf.mxu0 }
 0x361   :  { %329 = vmatpush.msra.mxu3 %v304_v33 }
 0x362   :  { %745 = vmatmul.msk.f32.vlgmr.msra.gmra.mxu3 %vm307_vm8, %v1010_v32 }
 0x363   :  { %747 = vmatpush.msk.msrb.mxu3 %vm71_vm0, %v897_v0 }
 0x365   :  { %351 = vmatpush.msrb.mxu3 %v1014_v34 }
 0x367   :  { %352 = vmatpush.msrb.mxu3 %v1018_v35 }
 0x36a   :  { %746 = vmatmul.msk.f32.gmra.mxu3 %vm307_vm8, %v1024_v36 }
 0x372   :  { %748 = vmatmul.msk.f32.vlgmr.msrb.gmra.mxu3 %vm61_vm1, %v948_v3 }
 0x37a   :  { %749 = vmatmul.msk.f32.gmra.mxu3 %vm61_vm1, %v953_v4 }
 0x382   :  { %750 = vmatmul.msk.f32.gmra.mxu3 %vm61_vm1, %v967_v19 }
 0x3e5   :  { %v1035_v0 = vpop.f32.mrf.mxu3 }
 0x3e6   :  { %v590_v10 = vsel %vm175_vm3, %v1035_v0, 0.0  ;;  %v606_v12 = vmul.f32 %v1035_v0, %v1035_v0 }
 0x3e8   :  { %v608_v13 = vsel %vm175_vm3, %v606_v12, 0.0 }
 0x3ed   :  { %v1037_v37 = vpop.f32.mrf.mxu3 }
 0x3ee   :  { %v593_v11 = vsel %vm175_vm3, %v1037_v37, 0.0  ;;  %v607_v14 = vmul.f32 %v1037_v37, %v1037_v37 }
 0x3f0   :  { %v611_v15 = vsel %vm175_vm3, %v607_v14, 0.0 }
 0x3f5   :  { %v354_v38 = vpop.f32.mrf.mxu3 }
 0x3f6   :  { %363 = vxpose.xlu2.b32.start.end [1/1] (short) (narrow) %v354_v38, 32 }
 0x3fd   :  { %v357_v39 = vpop.f32.mrf.mxu3 }
 0x3fe   :  { %422 = vmatpush.msra.mxu2 %v357_v39 }
 0x48f   :  { %v379_v40 = vpop.trf.xlu2 }
 0x490   :  { %751 = vmatmul.msk.f32.vlgmr.msra.gmra.mxu2 %vm133_vm2, %v379_v40 }
 0x497   :  { %v380_v41 = vpop.trf.xlu2 }
 0x498   :  { %752 = vmatmul.msk.f32.gmra.mxu2 %vm133_vm2, %v380_v41 }
 0x49f   :  { %v381_v3 = vpop.trf.xlu2 }
 0x4a0   :  { %753 = vmatmul.msk.f32.gmra.mxu2 %vm133_vm2, %v381_v3 }
 0x4a7   :  { %v382_v4 = vpop.trf.xlu2 }
 0x4a8   :  { %754 = vmatmul.msk.f32.gmra.mxu2 %vm133_vm2, %v382_v4 }
 0x513   :  { %v424_v19 = vpop.f32.mrf.mxu2 }
 0x514   :  { %v436_v48 = vsel %vm175_vm3, %v424_v19, -inf }
 0x51b   :  { %v427_v42 = vpop.f32.mrf.mxu2 }
 0x51c   :  { %v439_v47 = vsel %vm175_vm3, %v427_v42, -inf }
 0x523   :  { %v430_v43 = vpop.f32.mrf.mxu2 }
 0x524   :  { %v442_v44 = vsel %vm175_vm3, %v430_v43, -inf }
 0x525   :  { %443 = vmax.xlane.f32.xlu1 %v442_v44 }
 0x52b   :  { %v433_v45 = vpop.f32.mrf.mxu2 }
 0x52c   :  { %v445_v46 = vsel %vm175_vm3, %v433_v45, -inf }
 0x52d   :  { %446 = vmax.xlane.f32.xlu1 %v445_v46 }
 0x535   :  { %440 = vmax.xlane.f32.xlu1 %v439_v47 }
 0x53d   :  { %437 = vmax.xlane.f32.xlu1 %v436_v48 }
 0x598   :  { %v444_v49 = vpop.xlane.xlu1 %443 }
 0x599   :  { %v450_v50 = vsub.f32 %v430_v43, %v444_v49 }
 0x59b   :  { %v456_v51 = vmul.f32 1.442695, %v450_v50 }
 0x59d   :  { %795 = vpow2.f32 %v456_v51 }
 0x5a0   :  { %v447_v52 = vpop.xlane.xlu1 %446 }
 0x5a1   :  { %v451_v53 = vsub.f32 %v433_v45, %v447_v52 }
 0x5a3   :  { %v1047_v54 = vpop.eup %795  ;;  %v458_v55 = vmul.f32 1.442695, %v451_v53 }
 0x5a4   :  { %v466_v56 = vsel %vm175_vm3, %v1047_v54, 0.0 }
 0x5a5   :  { %797 = vpow2.f32 %v458_v55  ;;  %467 = vadd.xlane.f32.xlu2 %v466_v56 }
 0x5a8   :  { %v441_v57 = vpop.xlane.xlu1 %440 }
 0x5a9   :  { %v449_v58 = vsub.f32 %v427_v42, %v441_v57 }
 0x5ab   :  { %v1051_v59 = vpop.eup %797  ;;  %v454_v60 = vmul.f32 1.442695, %v449_v58 }
 0x5ac   :  { %v469_v61 = vsel %vm175_vm3, %v1051_v59, 0.0 }
 0x5ad   :  { %799 = vpow2.f32 %v454_v60  ;;  %470 = vadd.xlane.f32.xlu1 %v469_v61 }
 0x5b0   :  { %v438_v62 = vpop.xlane.xlu1 %437 }
 0x5b1   :  { %v448_v63 = vsub.f32 %v424_v19, %v438_v62 }
 0x5b3   :  { %v1055_v5 = vpop.eup %799  ;;  %v452_v6 = vmul.f32 1.442695, %v448_v63 }
 0x5b4   :  { %v463_v7 = vsel %vm175_vm3, %v1055_v5, 0.0 }
 0x5b5   :  { %801 = vpow2.f32 %v452_v6  ;;  %464 = vadd.xlane.f32.xlu1 %v463_v7 }
 0x5bb   :  { %v1059_v8 = vpop.eup %801 }
 0x5bc   :  { %v460_v9 = vsel %vm175_vm3, %v1059_v8, 0.0 }
 0x5bd   :  { %461 = vadd.xlane.f32.xlu1 %v460_v9 }
 0x5c5   :  { %591 = vadd.xlane.f32.xlu1 %v590_v10 }
 0x5cd   :  { %594 = vadd.xlane.f32.xlu1 %v593_v11  ;;  %v360_v11 = vpop.f32.mrf.mxu3 }
 0x5d5   :  { %609 = vadd.xlane.f32.xlu1 %v608_v13 }
 0x5dd   :  { %612 = vadd.xlane.f32.xlu1 %v611_v15 }
 0x618   :  { %v468_v16 = vpop.xlane.xlu2 %467 }
 0x619   :  { %803 = vrcp.f32 %v468_v16  ;;  %vm507_vm2 = vweird.f32 %v468_v16  ;;  %v513_v31 = vand.u32 2147483648, %v468_v16  ;;  %v511_v38 = vand.u32 2147483647, %v468_v16 }
 0x61b   :  { %v514_v43 = vor.u32 1.1754944e-38, %v513_v31  ;;  %vm512_vm13 = vcmp.eq.f32.partialorder %v511_v38, 8.507059e+37 }
 0x61f   :  { %v804_v17 = vpop.eup %803 }
 0x620   :  { %v503_v18 = vmul.f32 %v804_v17, %v468_v16  ;;  %v471_v20 = vpop.xlane.xlu1 %470  ;;  %vm508_vm0 = vweird.f32 %v804_v17 }
 0x621   :  { %805 = vrcp.f32 %v471_v20  ;;  %v528_v27 = vand.u32 2147483648, %v471_v20  ;;  %v526_v29 = vand.u32 2147483647, %v471_v20  ;;  %vm1073_vm9 = vmor %vm507_vm2, %vm508_vm0  ;;  %vm522_vm10 = vweird.f32 %v471_v20 }
 0x622   :  { %v504_v21 = vsub.f32 1.0, %v503_v18 }
 0x623   :  { %v529_v41 = vor.u32 1.1754944e-38, %v528_v27  ;;  %vm527_vm12 = vcmp.eq.f32.partialorder %v526_v29, 8.507059e+37  ;;  %v898_v27 = vmov 0  }
 0x624   :  { %v505_v23 = vmul.f32 %v804_v17, %v504_v21  ;;  %775 = vset.pattern.permute.xlu0 %v898_v27  ;;  %776 = vset.pattern.permute.xlu1 %v898_v27 }
 0x626   :  { %v506_v28 = vadd.f32 %v804_v17, %v505_v23 }
 0x627   :  { %v806_v22 = vpop.eup %805 }
 0x628   :  { %v518_v24 = vmul.f32 %v806_v22, %v471_v20  ;;  %v465_v25 = vpop.xlane.xlu1 %464  ;;  %vm523_vm1 = vweird.f32 %v806_v22  ;;  %v510_v42 = vsel %vm1073_vm9, %v804_v17, %v506_v28 }
 0x629   :  { %807 = vrcp.f32 %v465_v25  ;;  %vm524_vm11 = vmor %vm522_vm10, %vm523_vm1  ;;  %v498_v47 = vand.u32 2147483648, %v465_v25  ;;  %v515_v48 = vsel %vm512_vm13, %v514_v43, %v510_v42  ;;  %v496_v50 = vand.u32 2147483647, %v465_v25 }
 0x62a   :  { %v519_v26 = vsub.f32 1.0, %v518_v24  ;;  %vm492_vm15 = vweird.f32 %v465_v25  ;;  %v516_v51 = vmul.f32 %v1047_v54, %v515_v48 }
 0x62b   :  { %v499_v55 = vor.u32 1.1754944e-38, %v498_v47  ;;  %vm497_vm5 = vcmp.eq.f32.partialorder %v496_v50, 8.507059e+37  ;;  %v59_v50 = vld [vmem:[%s1133_s3] sm:$0xff] }
 0x62c   :  { %v520_v30 = vmul.f32 %v806_v22, %v519_v26 }
 0x62e   :  { %v521_v39 = vadd.f32 %v806_v22, %v520_v30 }
 0x62f   :  { %v808_v40 = vpop.eup %807 }
 0x630   :  { %v488_v3 = vmul.f32 %v808_v40, %v465_v25  ;;  %v462_v4 = vpop.xlane.xlu1 %461  ;;  %v525_v19 = vsel %vm524_vm11, %v806_v22, %v521_v39  ;;  %vm493_vm14 = vweird.f32 %v808_v40 }
 0x631   :  { %809 = vrcp.f32 %v462_v4  ;;  %v530_v44 = vsel %vm527_vm12, %v529_v41, %v525_v19  ;;  %vm494_vm4 = vmor %vm492_vm15, %vm493_vm14  ;;  %v483_v61 = vand.u32 2147483648, %v462_v4  ;;  %v481_v63 = vand.u32 2147483647, %v462_v4 }
 0x632   :  { %v489_v45 = vsub.f32 1.0, %v488_v3  ;;  %v531_v46 = vmul.f32 %v1051_v59, %v530_v44  ;;  %vm477_vm7 = vweird.f32 %v462_v4 }
 0x633   :  { %v484_v6 = vor.u32 1.1754944e-38, %v483_v61  ;;  %vm482_vm1 = vcmp.eq.f32.partialorder %v481_v63, 8.507059e+37 }
 0x634   :  { %v490_v49 = vmul.f32 %v808_v40, %v489_v45  ;;  %755 = vmatpush.xpose.msk.msrb.mxu2 %vm175_vm3, %v531_v46 }
 0x636   :  { %v491_v52 = vadd.f32 %v808_v40, %v490_v49 }
 0x637   :  { %v810_v53 = vpop.eup %809 }
 0x638   :  { %v473_v56 = vmul.f32 %v810_v53, %v462_v4  ;;  %756 = vmatpush.xpose.msk.msrb.mxu2 %vm175_vm3, %v516_v51  ;;  %v495_v57 = vsel %vm494_vm4, %v808_v40, %v491_v52  ;;  %vm478_vm6 = vweird.f32 %v810_v53  ;;  %v592_v17 = vpop.xlane.xlu1 %591 }
 0x639   :  { %v500_v58 = vsel %vm497_vm5, %v499_v55, %v495_v57  ;;  %vm479_vm0 = vmor %vm477_vm7, %vm478_vm6 }
 0x63a   :  { %v474_v59 = vsub.f32 1.0, %v473_v56  ;;  %v501_v60 = vmul.f32 %v1055_v5, %v500_v58 }
 0x63c   :  { %v475_v62 = vmul.f32 %v810_v53, %v474_v59  ;;  %757 = vmatpush.xpose.msk.msrb.mxu2 %vm175_vm3, %v501_v60  ;;  %v60_v59 = vld [vmem:[%s1133_s3 + $0x8] sm:$0xff]  ;;  %s901_s3 = smov [#allocation7]  }
 0x63d   :  { %s715_s7 = sshll.u32 %s901_s3, 4  ;;  %s716_s7 = int_to_ptr.vmem [resolvable:$true] %s715_s7 }
 0x63e   :  { %v476_v54 = vadd.f32 %v810_v53, %v475_v62 }
 0x640   :  { %v480_v7 = vsel %vm479_vm0, %v810_v53, %v476_v54  ;;  %v595_v18 = vpop.xlane.xlu1 %594  ;;  %v900_v54 = vmov 1  }
 0x641   :  { %v485_v9 = vsel %vm482_vm1, %v484_v6, %v480_v7 }
 0x642   :  { %v486_v10 = vmul.f32 %v1059_v8, %v485_v9 }
 0x644   :  { %758 = vmatpush.xpose.msk.msrb.mxu2 %vm175_vm3, %v486_v10 }
 0x647   :  { %759 = vmatmul.msk.f32.vlgmr.msrb.gmra.mxu2 %vm175_vm3, %v360_v11 }
 0x648   :  { %v610_v20 = vpop.xlane.xlu1 %609 }
 0x650   :  { %v613_v21 = vpop.xlane.xlu1 %612 }
 0x6ca   :  { %v564_v5 = vpop.f32.mrf.mxu2 }
 0x6cb   :  { %582 = vmatpush.msra.mxu0 %v564_v5  ;;  %764 = vmatpush.msrb.mxu1 %v564_v5 }
 0x6cc   :  { %761 = vmatmul.msk.f32.vlgmr.msra.gmra.mxu0 %vm307_vm8, %v1010_v32  ;;  %762 = vmatmul.msk.f32.vlgmr.msrb.gmra.mxu1 %vm307_vm8, %v1024_v36 }
 0x749   :  { %v1092_v12 = vpop.f32.mrf.mxu0  ;;  %v1096_v8 = vpop.f32.mrf.mxu1 }
 0x74a   :  { %v598_v13 = vsel %vm175_vm3, %v1092_v12, 0.0  ;;  %v601_v14 = vsel %vm175_vm3, %v1096_v8, 0.0  ;;  %v616_v15 = vmul.f32 %v1092_v12, %v1092_v12  ;;  %v617_v36 = vmul.f32 %v1096_v8, %v1096_v8 }
 0x74b   :  { %599 = vadd.xlane.f32.xlu1 %v598_v13 }
 0x74c   :  { %v618_v32 = vsel %vm175_vm3, %v616_v15, 0.0  ;;  %v621_v16 = vsel %vm175_vm3, %v617_v36, 0.0 }
 0x753   :  { %602 = vadd.xlane.f32.xlu1 %v601_v14 }
 0x75b   :  { %619 = vadd.xlane.f32.xlu1 %v618_v32 }
 0x763   :  { %622 = vadd.xlane.f32.xlu1 %v621_v16 }
 0x7be   :  { %v600_v22 = vpop.xlane.xlu1 %599 }
 0x7bf   :  { %v604_v24 = vadd.f32 %v600_v22, %v592_v17 }
 0x7c1   :  { %v626_v25 = vmul.f32 0.015625, %v604_v24 }
 0x7c3   :  { %v630_v30 = vmul.f32 %v626_v25, %v626_v25 }
 0x7c6   :  { %v603_v23 = vpop.xlane.xlu1 %602 }
 0x7c7   :  { %v605_v29 = vadd.f32 %v603_v23, %v595_v18 }
 0x7c9   :  { %v627_v38 = vmul.f32 0.015625, %v605_v29 }
 0x7cb   :  { %v631_v3 = vmul.f32 %v627_v38, %v627_v38 }
 0x7ce   :  { %v620_v26 = vpop.xlane.xlu1 %619 }
 0x7cf   :  { %v624_v28 = vadd.f32 %v620_v26, %v610_v20 }
 0x7d1   :  { %v628_v31 = vmul.f32 0.015625, %v624_v28 }
 0x7d3   :  { %v632_v33 = vsub.f32 %v628_v31, %v630_v30 }
 0x7d5   :  { %v634_v39 = vadd.f32 1e-05, %v632_v33 }
 0x7d6   :  { %v623_v40 = vpop.xlane.xlu1 %622 }
 0x7d7   :  { %811 = vrsqrt.f32 %v634_v39  ;;  %v625_v41 = vadd.f32 %v623_v40, %v613_v21  ;;  %vm642_vm2 = vweird.f32 %v634_v39 }
 0x7d9   :  { %v629_v4 = vmul.f32 0.015625, %v625_v41 }
 0x7db   :  { %v633_v19 = vsub.f32 %v629_v4, %v631_v3 }
 0x7dd   :  { %v812_v42 = vpop.eup %811  ;;  %v635_v43 = vadd.f32 1e-05, %v633_v19 }
 0x7de   :  { %v637_v44 = vmul.f32 %v812_v42, %v634_v39  ;;  %vm643_vm8 = vweird.f32 %v812_v42 }
 0x7df   :  { %813 = vrsqrt.f32 %v635_v43  ;;  %vm644_vm9 = vmor %vm642_vm2, %vm643_vm8  ;;  %vm652_vm11 = vweird.f32 %v635_v43 }
 0x7e0   :  { %v638_v45 = vmul.f32 %v812_v42, %v637_v44 }
 0x7e2   :  { %v639_v46 = vmul.f32 0.5, %v638_v45 }
 0x7e4   :  { %v640_v47 = vsub.f32 1.5, %v639_v46 }
 0x7e5   :  { %v814_v48 = vpop.eup %813 }
 0x7e6   :  { %v647_v49 = vmul.f32 %v814_v48, %v635_v43  ;;  %v641_v51 = vmul.f32 %v812_v42, %v640_v47  ;;  %vm653_vm10 = vweird.f32 %v814_v48 }
 0x7e7   :  { %vm654_vm12 = vmor %vm652_vm11, %vm653_vm10 }
 0x7e8   :  { %v648_v52 = vmul.f32 %v814_v48, %v647_v49  ;;  %v645_v53 = vsel %vm644_vm9, %v812_v42, %v641_v51 }
 0x7e9   :  { %v656_v55 = vmul.f32 %v645_v53, %v59_v50 }
 0x7ea   :  { %v649_v56 = vmul.f32 0.5, %v648_v52 }
 0x7eb   :  { %v658_v57 = vmul.f32 %v656_v55, %v626_v25 }
 0x7ec   :  { %v650_v58 = vsub.f32 1.5, %v649_v56 }
 0x7ed   :  { %662 = vrot.lane.b32.xlu0 %v658_v57, %s899_s30 }
 0x7ee   :  { %v651_v60 = vmul.f32 %v814_v48, %v650_v58 }
 0x7f0   :  { %v655_v61 = vsel %vm654_vm12, %v814_v48, %v651_v60 }
 0x7f1   :  { %v657_v62 = vmul.f32 %v655_v61, %v60_v59 }
 0x7f3   :  { %v659_v63 = vmul.f32 %v657_v62, %v627_v38 }
 0x7f5   :  { %672 = vperm.xlu0 %775, %v656_v55   ;;  %664 = vrot.lane.b32.xlu1 %v659_v63, %s899_s30 }
 0x7fd   :  { %677 = vperm.xlu1 %776, %v657_v62   ;;  %777 = vset.pattern.permute.xlu0 %v900_v54 }
 0x805   :  { %778 = vset.pattern.permute.xlu1 %v900_v54 }
 0x85f   :  { %v663_v6 = vpop.permute.xlu0 %662 }
 0x860   :  { %v668_v7 = vsub.f32 %v59_v50, %v663_v6 }
 0x862   :  { %684 = vperm.xlu0 %777, %v668_v7  }
 0x867   :  { %v665_v9 = vpop.permute.xlu1 %664  ;;  %v673_v11 = vpop.permute.xlu0 %672 }
 0x868   :  { %v669_v10 = vsub.f32 %v60_v59, %v665_v9  ;;  %v680_v5 = vmul.f32 %v673_v11, %v1035_v0  ;;  %v700_v13 = vmul.f32 %v673_v11, %v1092_v12 }
 0x86a   :  { %689 = vperm.xlu1 %778, %v669_v10  }
 0x86f   :  { %v678_v14 = vpop.permute.xlu1 %677 }
 0x870   :  { %v681_v21 = vmul.f32 %v678_v14, %v1037_v37  ;;  %v701_v22 = vmul.f32 %v678_v14, %v1096_v8 }
 0x8d4   :  { %v685_v15 = vpop.permute.xlu0 %684 }
 0x8d5   :  { %v692_v32 = vadd.f32 %v685_v15, %v680_v5  ;;  %v702_v36 = vadd.f32 %v700_v13, %v685_v15 }
 0x8d7   :  { %v694_v16 = vmax.f32 %v692_v32, 0.0  ;;  %v704_v17 = vmax.f32 %v702_v36, 0.0 }
 0x8d9   :  { %v696_v18 = vadd.f32 %v694_v16, %v945_v2  ;;  %v706_v20 = vadd.f32 %v704_v17, %v1018_v35 }
 0x8db   :  { %698 = vst.msk [vmem:[#allocation7] sm:$0xff] %vm175_vm3, %v696_v18 }
 0x8dc   :  { %709 = vst.msk [vmem:[#allocation7 + $0x10] sm:$0xff] %vm175_vm3, %v706_v20  ;;  %v690_v0 = vpop.permute.xlu1 %689 }
 0x8dd   :  { %v693_v12 = vadd.f32 %v690_v0, %v681_v21  ;;  %v703_v23 = vadd.f32 %v701_v22, %v690_v0 }
 0x8df   :  { %v695_v24 = vmax.f32 %v693_v12, 0.0  ;;  %v705_v25 = vmax.f32 %v703_v23, 0.0 }
 0x8e1   :  { %v697_v2 = vadd.f32 %v695_v24, %v943_v1  ;;  %v707_v35 = vadd.f32 %v705_v25, %v1014_v34 }
 0x8e3   :  { %699 = vst.msk [vmem:[#allocation7 + $0x8] sm:$0xff] %vm175_vm3, %v697_v2 }
 0x8e4   :  { %710 = vst.msk [vmem:[#allocation7 + $0x18] sm:$0xff] %vm175_vm3, %v707_v35 }
 0x8e5   :  { %723 = dma.vmem_to_hbm [thread:$0]  %s716_s7, 512, %s718_s10, [#allocation4], %s894_s23, %s894_s23, %s895_s24  }
 0x8e6   :  { %891 = dma.done.wait [#allocation4], 512  }
 0x8e7   :  { %892 = vsyncadd [#allocation4], 4294966784 }
 0x8e8   :  { %728 = vsyncpa [#allocation3], 1 }
 0x8e9   :  { %729 = vsyncpa [#allocation6], 1 }
 0x8ea   :  { %730 = vsyncpa [#allocation4], 1 }

</bundles_post_ra>
